<compile_context>
chip_gen: v7x
topology: tpu7x:2x2x1
jax: 0.10.0
libtpu: 0.0.40
codegen_flags: <defaults>
</compile_context>

<pallas_src>
import jax
import jax.numpy as jnp
from jax.experimental import pallas as pl
from jax.experimental.pallas import tpu as pltpu

HIDDEN = 512  # matches `hidden = 512` in trainer.py

_LANE = 128
_SUBLANE = 8


def _round_up(n, m):
    return ((n + m - 1) // m) * m


def _critic_kernel(x_ref, w1_ref, b1_ref, w2_ref, b2_ref, w3_ref, b3_ref, o_ref):
    # Fused 3-layer MLP on one batch tile. All matmuls hit the MXU with f32 accumulation;
    # bias-add / ReLU stay in f32 on the VPU (required on v5e: no bf16 VALU).
    cdt = w1_ref.dtype                      # MXU operand dtype (bf16 or f32)
    x = x_ref[...].astype(cdt)              # in-kernel cast: x's HBM traffic is a single f32 read

    h1 = jnp.dot(x, w1_ref[...], preferred_element_type=jnp.float32) + b1_ref[...]
    h1 = jnp.maximum(h1, 0.0)               # ReLU

    h2 = jnp.dot(h1.astype(cdt), w2_ref[...], preferred_element_type=jnp.float32) + b2_ref[...]
    h2 = jnp.maximum(h2, 0.0)               # ReLU

    out = jnp.dot(h2.astype(cdt), w3_ref[...], preferred_element_type=jnp.float32) + b3_ref[...]
    # output_activation = Identity -> no-op.
    # W3/b3 are lane-padded to 128 cols for the MXU; store only the logical columns.
    d_out = o_ref.shape[-1]
    o_ref[...] = out[:, :d_out].astype(o_ref.dtype)


def prepare_params(params, compute_dtype=jnp.bfloat16):
    """One-time, cacheable weight prep: bf16 casts + lane-padding of the output layer.

    Do this once per parameter update, not per forward call.
    """
    w1, b1 = params["w1"], params["b1"]
    w2, b2 = params["w2"], params["b2"]
    w3, b3 = params["w3"], params["b3"]
    d_out = w3.shape[1]

    # Pad the final layer's columns to 128 so its matmul feeds the MXU lane-dense;
    # the kernel slices the result back, so the stored output stays narrow.
    d_out_p = max(_LANE, _round_up(d_out, _LANE))
    if d_out_p != d_out:
        w3 = jnp.zeros((w3.shape[0], d_out_p), w3.dtype).at[:, :d_out].set(w3)
        b3 = jnp.zeros((1, d_out_p), b3.dtype).at[:, :d_out].set(b3)

    return dict(
        w1=w1.astype(compute_dtype), b1=b1.astype(jnp.float32),
        w2=w2.astype(compute_dtype), b2=b2.astype(jnp.float32),
        w3=w3.astype(compute_dtype), b3=b3.astype(jnp.float32),
        d_out=d_out,
    )


def critic_forward(x, prepped, *, batch_tile=None):
    """x: (B, D_in) float32.  prepped: output of prepare_params()."""
    w1, b1 = prepped["w1"], prepped["b1"]
    w2, b2 = prepped["w2"], prepped["b2"]
    w3, b3 = prepped["w3"], prepped["b3"]
    d_out = prepped["d_out"]

    B, d_in = x.shape
    h1_dim, h2_dim = w1.shape[1], w2.shape[1]
    d_out_p = w3.shape[1]

    # Sublane granularity: bf16 packs 16 rows per vreg, f32 packs 8.
    sub = _SUBLANE * (4 // jnp.dtype(w1.dtype).itemsize)

    # ---- batch tile selection.
    #   * B <= 256 rows: one grid step (per-step overhead ~0.35us would dominate).
    #   * larger B: tiles up to 1024 rows, sized so the grid has >= 2 steps
    #     (v7x shards the "parallel" axis across its two TensorCores).
    if batch_tile is None:
        B_r = _round_up(B, sub)
        if B_r <= 256:
            batch_tile = B_r
        else:
            batch_tile = min(1024, _round_up(pl.cdiv(B_r, 2), sub))
    else:
        batch_tile = _round_up(max(batch_tile, sub), sub)

    B_p = _round_up(B, batch_tile)
    if B_p != B:
        x = jnp.zeros((B_p, d_in), x.dtype).at[:B, :].set(x)

    grid = (B_p // batch_tile,)

    def rep(i):  # weights / biases: same (whole) block every grid step -> VMEM-resident
        return (0, 0)

    flops = 2 * B_p * (d_in * h1_dim + h1_dim * h2_dim + h2_dim * d_out_p)
    bytes_accessed = int(
        B_p * d_in * 4                                               # f32 x read
        + sum(a.size * a.dtype.itemsize for a in (w1, b1, w2, b2, w3, b3))
        + B_p * d_out * 4                                            # narrow f32 output write
    )

    out = pl.pallas_call(
        _critic_kernel,
        out_shape=jax.ShapeDtypeStruct((B_p, d_out), jnp.float32),
        grid_spec=pltpu.PrefetchScalarGridSpec(
            num_scalar_prefetch=0,
            grid=grid,
            in_specs=[
                pl.BlockSpec((batch_tile, d_in), lambda i: (i, 0)),   # x tile (f32)
                pl.BlockSpec(w1.shape, rep),                          # W1 (D_in, 512)
                pl.BlockSpec(b1.shape, rep),                          # b1 (1, 512)
                pl.BlockSpec(w2.shape, rep),                          # W2 (512, 256)
                pl.BlockSpec(b2.shape, rep),                          # b2 (1, 256)
                pl.BlockSpec(w3.shape, rep),                          # W3 (256, d_out_p)
                pl.BlockSpec(b3.shape, rep),                          # b3 (1, d_out_p)
            ],
            out_specs=pl.BlockSpec((batch_tile, d_out), lambda i: (i, 0)),
        ),
        compiler_params=pltpu.CompilerParams(
            dimension_semantics=("parallel",),
        ),
        cost_estimate=pl.CostEstimate(
            flops=flops, transcendentals=0, bytes_accessed=bytes_accessed),
    )(x, w1, b1, w2, b2, w3, b3)

    # Strip batch padding only (output is already narrow).
    return out[:B, :] if B_p != B else out


def init_params(key, input_dimension, output_dimension):
    """Deterministic init; mirrors nn.Linear's U(-1/sqrt(fan_in), 1/sqrt(fan_in))."""
    ks = jax.random.split(key, 6)

    def linear(kw, kb, fan_in, fan_out):
        bound = 1.0 / jnp.sqrt(fan_in)
        w = jax.random.uniform(kw, (fan_in, fan_out), jnp.float32, -bound, bound)
        b = jax.random.uniform(kb, (1, fan_out), jnp.float32, -bound, bound)
        return w, b

    w1, b1 = linear(ks[0], ks[1], input_dimension, HIDDEN)
    w2, b2 = linear(ks[2], ks[3], HIDDEN, HIDDEN // 2)
    w3, b3 = linear(ks[4], ks[5], HIDDEN // 2, output_dimension)
    return dict(w1=w1, b1=b1, w2=w2, b2=b2, w3=w3, b3=b3)


def critic_reference(x, p):
    h1 = jnp.maximum(x @ p["w1"] + p["b1"], 0.0)
    h2 = jnp.maximum(h1 @ p["w2"] + p["b2"], 0.0)
    return h2 @ p["w3"] + p["b3"]


if __name__ == "__main__":
    key = jax.random.PRNGKey(0)
    k_param, k_x = jax.random.split(key)

    batch = 8
    input_dimension = 32
    output_dimension = 4

    params = init_params(k_param, input_dimension, output_dimension)
    # Weight prep is loop-invariant: do it once and reuse across forward calls.
    prepped_f32 = prepare_params(params, compute_dtype=jnp.float32)
    prepped_bf16 = prepare_params(params, compute_dtype=jnp.bfloat16)

    x = jax.random.normal(k_x, (batch, input_dimension), jnp.float32)
    ref = critic_reference(x, params)

    # 1) f32 compute path: tight tolerance vs reference.
    out_f32 = jax.block_until_ready(critic_forward(x, prepped_f32))
    assert out_f32.shape == (batch, output_dimension)
    assert jnp.allclose(out_f32, ref, atol=1e-4, rtol=1e-4), "f32 mismatch vs reference"

    # 2) Default bf16-MXU / f32-accumulate path (looser tolerance).
    out_bf16 = jax.block_until_ready(critic_forward(x, prepped_bf16))
    assert out_bf16.shape == (batch, output_dimension)
    assert jnp.allclose(out_bf16, ref, atol=3e-2, rtol=3e-2), "bf16 mismatch vs reference"

    # 3) Ragged batch (exercises the wrapper's batch padding).
    x10 = jax.random.normal(jax.random.PRNGKey(1), (10, input_dimension), jnp.float32)
    out10 = jax.block_until_ready(critic_forward(x10, prepped_f32))
    assert out10.shape == (10, output_dimension)
    assert jnp.allclose(out10, critic_reference(x10, params), atol=1e-4, rtol=1e-4)

    # 4) Multi-tile grid (exercises >=2 grid steps / v7x dual-TC path) with a forced tile.
    x40 = jax.random.normal(jax.random.PRNGKey(2), (40, input_dimension), jnp.float32)
    out40 = jax.block_until_ready(critic_forward(x40, prepped_bf16, batch_tile=16))
    assert out40.shape == (40, output_dimension)
    assert jnp.allclose(out40, critic_reference(x40, params), atol=3e-2, rtol=3e-2)

    print("KERNEL_OK")
</pallas_src>

<mosaic_0001>
module attributes {stable_mosaic.version = 11 : i64} {
  func.func @_critic_kernel(%arg0: i32, %arg1: memref<8x32xf32, #tpu.memory_space<vmem>>, %arg2: memref<32x512xf32, #tpu.memory_space<vmem>>, %arg3: memref<1x512xf32, #tpu.memory_space<vmem>>, %arg4: memref<512x256xf32, #tpu.memory_space<vmem>>, %arg5: memref<1x256xf32, #tpu.memory_space<vmem>>, %arg6: memref<256x128xf32, #tpu.memory_space<vmem>>, %arg7: memref<1x128xf32, #tpu.memory_space<vmem>>, %arg8: memref<8x4xf32, #tpu.memory_space<vmem>>) attributes {dimension_semantics = [#tpu.dimension_semantics<parallel>], iteration_bounds = array<i64: 1>, scalar_prefetch = 0 : i64, scratch_operands = 0 : i64, tpu.core_type = #tpu.core_type<tc>, window_params = [{transform_indices = @transform_0, window_bounds = array<i64: 8, 32>}, {pipeline_mode = #tpu.pipeline_mode<synchronous>, transform_indices = @transform_1, window_bounds = array<i64: 32, 512>}, {pipeline_mode = #tpu.pipeline_mode<synchronous>, transform_indices = @transform_2, window_bounds = array<i64: 1, 512>}, {pipeline_mode = #tpu.pipeline_mode<synchronous>, transform_indices = @transform_3, window_bounds = array<i64: 512, 256>}, {pipeline_mode = #tpu.pipeline_mode<synchronous>, transform_indices = @transform_4, window_bounds = array<i64: 1, 256>}, {pipeline_mode = #tpu.pipeline_mode<synchronous>, transform_indices = @transform_5, window_bounds = array<i64: 256, 128>}, {pipeline_mode = #tpu.pipeline_mode<synchronous>, transform_indices = @transform_6, window_bounds = array<i64: 1, 128>}, {transform_indices = @transform_7, window_bounds = array<i64: 8, 4>}]} {
    %c0 = arith.constant 0 : index
    %c0_0 = arith.constant 0 : index
    %0 = vector.load %arg1[%c0, %c0_0] : memref<8x32xf32, #tpu.memory_space<vmem>>, vector<8x32xf32>
    %c0_1 = arith.constant 0 : index
    %c0_2 = arith.constant 0 : index
    %1 = vector.load %arg2[%c0_1, %c0_2] : memref<32x512xf32, #tpu.memory_space<vmem>>, vector<32x512xf32>
    %cst = arith.constant dense<0.000000e+00> : vector<8x512xf32>
    %2 = tpu.matmul %0, %1, %cst {dimension_numbers = #tpu.dot_dimension_numbers<[1], [0], [0], [1], [0, 0, 1, 1], [], []>} : vector<8x32xf32>, vector<32x512xf32>, vector<8x512xf32> -> vector<8x512xf32>
    %c0_3 = arith.constant 0 : index
    %c0_4 = arith.constant 0 : index
    %3 = vector.load %arg3[%c0_3, %c0_4] : memref<1x512xf32, #tpu.memory_space<vmem>>, vector<1x512xf32>
    %4 = vector.broadcast %3 : vector<1x512xf32> to vector<8x512xf32>
    %5 = arith.addf %2, %4 : vector<8x512xf32>
    %cst_5 = arith.constant 0.000000e+00 : f32
    %6 = vector.broadcast %cst_5 : f32 to vector<8x512xf32>
    %7 = arith.maximumf %5, %6 : vector<8x512xf32>
    %c0_6 = arith.constant 0 : index
    %c0_7 = arith.constant 0 : index
    %8 = vector.load %arg4[%c0_6, %c0_7] : memref<512x256xf32, #tpu.memory_space<vmem>>, vector<512x256xf32>
    %cst_8 = arith.constant dense<0.000000e+00> : vector<8x256xf32>
    %9 = tpu.matmul %7, %8, %cst_8 {dimension_numbers = #tpu.dot_dimension_numbers<[1], [0], [0], [1], [0, 0, 1, 1], [], []>} : vector<8x512xf32>, vector<512x256xf32>, vector<8x256xf32> -> vector<8x256xf32>
    %c0_9 = arith.constant 0 : index
    %c0_10 = arith.constant 0 : index
    %10 = vector.load %arg5[%c0_9, %c0_10] : memref<1x256xf32, #tpu.memory_space<vmem>>, vector<1x256xf32>
    %11 = vector.broadcast %10 : vector<1x256xf32> to vector<8x256xf32>
    %12 = arith.addf %9, %11 : vector<8x256xf32>
    %cst_11 = arith.constant 0.000000e+00 : f32
    %13 = vector.broadcast %cst_11 : f32 to vector<8x256xf32>
    %14 = arith.maximumf %12, %13 : vector<8x256xf32>
    %c0_12 = arith.constant 0 : index
    %c0_13 = arith.constant 0 : index
    %15 = vector.load %arg6[%c0_12, %c0_13] : memref<256x128xf32, #tpu.memory_space<vmem>>, vector<256x128xf32>
    %cst_14 = arith.constant dense<0.000000e+00> : vector<8x128xf32>
    %16 = tpu.matmul %14, %15, %cst_14 {dimension_numbers = #tpu.dot_dimension_numbers<[1], [0], [0], [1], [0, 0, 1, 1], [], []>} : vector<8x256xf32>, vector<256x128xf32>, vector<8x128xf32> -> vector<8x128xf32>
    %c0_15 = arith.constant 0 : index
    %c0_16 = arith.constant 0 : index
    %17 = vector.load %arg7[%c0_15, %c0_16] : memref<1x128xf32, #tpu.memory_space<vmem>>, vector<1x128xf32>
    %18 = vector.broadcast %17 : vector<1x128xf32> to vector<8x128xf32>
    %19 = arith.addf %16, %18 : vector<8x128xf32>
    %20 = vector.extract_strided_slice %19 {offsets = [0, 0], sizes = [8, 4], strides = [1, 1]} : vector<8x128xf32> to vector<8x4xf32>
    %c0_17 = arith.constant 0 : index
    %c0_18 = arith.constant 0 : index
    %21 = vector.load %arg8[%c0_17, %c0_18] : memref<8x4xf32, #tpu.memory_space<vmem>>, vector<8x4xf32>
    tpu.vector_store %arg8[%c0_17, %c0_18], %20 {strides = array<i32>} : memref<8x4xf32, #tpu.memory_space<vmem>>, vector<8x4xf32>,
    return
  }
  func.func @transform_0(%arg0: i32) -> (i32, i32) {
    %c0_i32 = arith.constant 0 : i32
    %c0_i32_0 = arith.constant 0 : i32
    return %arg0, %c0_i32 : i32, i32
  }
  func.func @transform_1(%arg0: i32) -> (i32, i32) {
    %c0_i32 = arith.constant 0 : i32
    %c0_i32_0 = arith.constant 0 : i32
    %c0_i32_1 = arith.constant 0 : i32
    return %c0_i32, %c0_i32_0 : i32, i32
  }
  func.func @transform_2(%arg0: i32) -> (i32, i32) {
    %c0_i32 = arith.constant 0 : i32
    %c0_i32_0 = arith.constant 0 : i32
    %c0_i32_1 = arith.constant 0 : i32
    return %c0_i32, %c0_i32_0 : i32, i32
  }
  func.func @transform_3(%arg0: i32) -> (i32, i32) {
    %c0_i32 = arith.constant 0 : i32
    %c0_i32_0 = arith.constant 0 : i32
    %c0_i32_1 = arith.constant 0 : i32
    return %c0_i32, %c0_i32_0 : i32, i32
  }
  func.func @transform_4(%arg0: i32) -> (i32, i32) {
    %c0_i32 = arith.constant 0 : i32
    %c0_i32_0 = arith.constant 0 : i32
    %c0_i32_1 = arith.constant 0 : i32
    return %c0_i32, %c0_i32_0 : i32, i32
  }
  func.func @transform_5(%arg0: i32) -> (i32, i32) {
    %c0_i32 = arith.constant 0 : i32
    %c0_i32_0 = arith.constant 0 : i32
    %c0_i32_1 = arith.constant 0 : i32
    return %c0_i32, %c0_i32_0 : i32, i32
  }
  func.func @transform_6(%arg0: i32) -> (i32, i32) {
    %c0_i32 = arith.constant 0 : i32
    %c0_i32_0 = arith.constant 0 : i32
    %c0_i32_1 = arith.constant 0 : i32
    return %c0_i32, %c0_i32_0 : i32, i32
  }
  func.func @transform_7(%arg0: i32) -> (i32, i32) {
    %c0_i32 = arith.constant 0 : i32
    %c0_i32_0 = arith.constant 0 : i32
    return %arg0, %c0_i32 : i32, i32
  }
}

</mosaic_0001>

<bundles_post_ra>
// kernel: tpu_custom_call.1
= control target key start
LH: loop header
LB: loop body
LE: loop exit
PB: predicated region body
PF: predicated region fallthrough
CT: control target
= control target key end

     0   :  { %12 = vsyncpa [#allocation3], 0  ;;  %s1120_s0 = inlined_call_operand.hbm [shape: f32[8,32], index: 0, kind: input, shape index: {}]   ;;  %s1121_s1 = inlined_call_operand.hbm [shape: f32[32,512], index: 1, kind: input, shape index: {}]   ;;  %s1122_s2 = inlined_call_operand.vmem [shape: f32[1,512], index: 2, kind: input, shape index: {}]   ;;  %s1123_s3 = inlined_call_operand.hbm [shape: f32[512,256], index: 3, kind: input, shape index: {}]   ;;  %s1124_s4 = inlined_call_operand.vmem [shape: f32[1,256], index: 4, kind: input, shape index: {}]   ;;  %s1125_s5 = inlined_call_operand.hbm [shape: f32[256,128], index: 5, kind: input, shape index: {}]   ;;  %s1126_s6 = inlined_call_operand.vmem [shape: f32[1,128], index: 6, kind: input, shape index: {}]   ;;  %s1127_s7 = inlined_call_operand.vmem [shape: f32[8,4], index: 7, kind: output, shape index: {}]  }
   0x1   :  { %13 = vsyncpa [#allocation5], 0 }
   0x2   :  { %14 = vsyncpa [#allocation8], 0  ;;  %s993_s24 = smov [#allocation4]   ;;  %s899_s28 = scalar_lea.hbm %s1121_s1, 2048 }
   0x3   :  { %s30_s25 = sshll.u32 %s993_s24, 4  ;;  %p900_p0 = scmp.ne.s32.totalorder %s1121_s1, %s899_s28  ;;  %s31_s25 = int_to_ptr.vmem [resolvable:$true] %s30_s25 }
   0x4   :  { %p903_p1 = scmp.lt.u32.totalorder %s899_s28, %s1121_s1 }
   0x6   :  { %p905_p2 = pnand %p903_p1, %p900_p0 }
   0x8   :  { %908 = shalt.err (!%p905_p2)
}
   0x9   :  { %s909_s10 = scalar_lea.vmem %s31_s25, 2048  ;;  %p914_p4 = scmp.lt.s32.totalorder %s31_s25, %s31_s25 }
   0xa   :  { %p910_p3 = scmp.ne.s32.totalorder %s31_s25, %s909_s10  ;;  %p915_p5 = scmp.lt.s32.totalorder %s909_s10, %s909_s10 }
   0xc   :  { %p916_p6 = por %p915_p5, %p914_p4 }
   0xe   :  { %p917_p7 = pnand %p916_p6, %p910_p3 }
  0x10   :  { %920 = shalt.err (!%p917_p7)
}
  0x11   :  { %s994_s11 = smov 512   ;;  %s995_s12 = smov 32  }
  0x12   :  { %36 = dma.hbm_to_vmem [thread:$0]  %s1121_s1, 2048, %s31_s25, [#allocation5], %s994_s11, %s994_s11, %s995_s12  }
  0x13   :  { %s996_s15 = smov [#allocation2]   ;;  %s997_s17 = smov [#allocation6]  }
  0x14   :  { %s21_s16 = sshll.u32 %s996_s15, 4  ;;  %s44_s18 = sshll.u32 %s997_s17, 4  ;;  %s22_s16 = int_to_ptr.vmem [resolvable:$true] %s21_s16  ;;  %s45_s18 = int_to_ptr.vmem [resolvable:$true] %s44_s18 }
  0x15   :  { %s921_s21 = scalar_lea.hbm %s1120_s0, 128 }
  0x16   :  { %p922_p8 = scmp.ne.s32.totalorder %s1120_s0, %s921_s21  ;;  %p925_p9 = scmp.lt.u32.totalorder %s921_s21, %s1120_s0 }
  0x18   :  { %p927_p10 = pnand %p925_p9, %p922_p8 }
  0x1a   :  { %930 = shalt.err (!%p927_p10)
}
  0x1b   :  { %s931_s1 = scalar_lea.vmem %s22_s16, 128  ;;  %p936_p12 = scmp.lt.s32.totalorder %s22_s16, %s22_s16 }
  0x1c   :  { %p932_p11 = scmp.ne.s32.totalorder %s22_s16, %s931_s1  ;;  %p937_p13 = scmp.lt.s32.totalorder %s931_s1, %s931_s1 }
  0x1e   :  { %p938_p0 = por %p937_p13, %p936_p12 }
  0x20   :  { %p939_p1 = pnand %p938_p0, %p932_p11 }
  0x22   :  { %942 = shalt.err (!%p939_p1)
}
  0x23   :  { %24 = dma.hbm_to_vmem [thread:$0]  %s1120_s0, 128, %s22_s16, [#allocation3]  }
  0x24   :  { %s943_s30 = scalar_lea.hbm %s1123_s3, 16384 }
  0x25   :  { %p944_p2 = scmp.ne.s32.totalorder %s1123_s3, %s943_s30  ;;  %p947_p3 = scmp.lt.u32.totalorder %s943_s30, %s1123_s3 }
  0x27   :  { %p949_p4 = pnand %p947_p3, %p944_p2 }
  0x29   :  { %952 = shalt.err (!%p949_p4)
}
  0x2a   :  { %s953_s12 = scalar_lea.vmem %s45_s18, 16384  ;;  %p958_p6 = scmp.lt.s32.totalorder %s45_s18, %s45_s18 }
  0x2b   :  { %p954_p5 = scmp.ne.s32.totalorder %s45_s18, %s953_s12  ;;  %p959_p7 = scmp.lt.s32.totalorder %s953_s12, %s953_s12 }
  0x2d   :  { %p960_p8 = por %p959_p7, %p958_p6 }
  0x2f   :  { %p961_p9 = pnand %p960_p8, %p954_p5 }
  0x31   :  { %964 = shalt.err (!%p961_p9)
}
  0x32   :  { %s998_s0 = smov 256   ;;  %s999_s13 = smov 16  }
  0x33   :  { %50 = dma.hbm_to_vmem [thread:$0]  %s1123_s3, 16384, %s45_s18, [#allocation5], %s998_s0, %s998_s0, %s999_s13  }
  0x34   :  { %s1000_s16 = smov [#allocation7]   ;;  %s965_s21 = scalar_lea.hbm %s1125_s5, 4096 }
  0x35   :  { %s58_s17 = sshll.u32 %s1000_s16, 4  ;;  %p966_p10 = scmp.ne.s32.totalorder %s1125_s5, %s965_s21  ;;  %s59_s17 = int_to_ptr.vmem [resolvable:$true] %s58_s17 }
  0x36   :  { %p969_p11 = scmp.lt.u32.totalorder %s965_s21, %s1125_s5 }
  0x38   :  { %p971_p12 = pnand %p969_p11, %p966_p10 }
  0x3a   :  { %974 = shalt.err (!%p971_p12)
}
  0x3b   :  { %s975_s1 = scalar_lea.vmem %s59_s17, 4096  ;;  %p980_p0 = scmp.lt.s32.totalorder %s59_s17, %s59_s17 }
  0x3c   :  { %p976_p13 = scmp.ne.s32.totalorder %s59_s17, %s975_s1  ;;  %p981_p1 = scmp.lt.s32.totalorder %s975_s1, %s975_s1 }
  0x3e   :  { %p982_p2 = por %p981_p1, %p980_p0 }
  0x40   :  { %p983_p3 = pnand %p982_p2, %p976_p13 }
  0x42   :  { %986 = shalt.err (!%p983_p3)
}
  0x43   :  { %s1001_s3 = smov 128   ;;  %s1002_s18 = smov 8  }
  0x44   :  { %64 = dma.hbm_to_vmem [thread:$0]  %s1125_s5, 4096, %s59_s17, [#allocation8], %s1001_s3, %s1001_s3, %s1002_s18  }
  0x45   :  { %987 = dma.done.wait [#allocation3], 128  }
  0x46   :  { %988 = vsyncadd [#allocation3], 4294967168 }
  0x47   :  { %989 = dma.done.wait [#allocation5], 18432  }
  0x48   :  { %990 = vsyncadd [#allocation5], 4294948864 }
  0x49   :  { %991 = dma.done.wait [#allocation8], 4096  }
  0x4a   :  { %992 = vsyncadd [#allocation8], 4294963200  ;;  %v1003_v0 = vmov 0.0   ;;  %v81_v1 = vld [vmem:[#allocation4 + $0x8] sm:$0xff]  ;;  %v80_v3 = vld [vmem:[#allocation4] sm:$0xff]  ;;  %vm118_vm0 = vcmask 261120  }
  0x4b   :  { %186 = vmatprep.mubr.f32.mxu0 %v1003_v0  ;;  %v85_v2 = vld [vmem:[#allocation4 + $0x28] sm:$0xff]  ;;  %v84_v5 = vld [vmem:[#allocation4 + $0x20] sm:$0xff]  ;;  %v83_v12 = vld [vmem:[#allocation4 + $0x18] sm:$0xff]  ;;  %vm661_vm1 = vcmask 31744  }
  0x4c   :  { %v708_v4 = vpack.c.bf16 %v85_v2, %v81_v1  ;;  %v89_v6 = vld [vmem:[#allocation4 + $0x48] sm:$0xff]  ;;  %v710_v8 = vpack.c.bf16 %v84_v5, %v80_v3  ;;  %v88_v10 = vld [vmem:[#allocation4 + $0x40] sm:$0xff]  ;;  %v87_v13 = vld [vmem:[#allocation4 + $0x38] sm:$0xff] }
  0x4d   :  { %v93_v7 = vld [vmem:[#allocation4 + $0x68] sm:$0xff]  ;;  %v92_v11 = vld [vmem:[#allocation4 + $0x60] sm:$0xff]  ;;  %v82_v15 = vld [vmem:[#allocation4 + $0x10] sm:$0xff]  ;;  %v716_v17 = vpack.c.bf16 %v87_v13, %v83_v12 }
  0x4e   :  { %v712_v9 = vpack.c.bf16 %v93_v7, %v89_v6  ;;  %709 = vmatprep.subr.bf16.mxu0 %v708_v4  ;;  %v714_v14 = vpack.c.bf16 %v92_v11, %v88_v10  ;;  %v86_v16 = vld [vmem:[#allocation4 + $0x30] sm:$0xff]  ;;  %v91_v18 = vld [vmem:[#allocation4 + $0x58] sm:$0xff]  ;;  %v269_v20 = vld [vmem:[#allocation6 + $0x8] sm:$0xff] }
  0x4f   :  { %711 = vmatpush1.bf16.msra.mxu0 %v710_v8  ;;  %v95_v19 = vld [vmem:[#allocation4 + $0x78] sm:$0xff]  ;;  %v268_v23 = vld [vmem:[#allocation6] sm:$0xff]  ;;  %v270_v24 = vld [vmem:[#allocation6 + $0x10] sm:$0xff]  ;;  %v718_v30 = vpack.c.bf16 %v86_v16, %v82_v15 }
  0x50   :  { %713 = vmatprep.subr.bf16.mxu0 %v712_v9  ;;  %v79_v21 = vld [vmem:[#allocation2] sm:$0xff]  ;;  %v726_v26 = vpack.c.bf16 %v270_v24, %v268_v23  ;;  %v273_v27 = vld [vmem:[#allocation6 + $0x28] sm:$0xff]  ;;  %v272_v29 = vld [vmem:[#allocation6 + $0x20] sm:$0xff]  ;;  %v720_v35 = vpack.c.bf16 %v95_v19, %v91_v18 }
  0x51   :  { %v271_v22 = vld [vmem:[#allocation6 + $0x18] sm:$0xff]  ;;  %v274_v32 = vld [vmem:[#allocation6 + $0x30] sm:$0xff]  ;;  %v277_v33 = vld [vmem:[#allocation6 + $0x48] sm:$0xff] }
  0x52   :  { %v724_v25 = vpack.c.bf16 %v271_v22, %v269_v20  ;;  %v275_v28 = vld [vmem:[#allocation6 + $0x38] sm:$0xff]  ;;  %v90_v36 = vld [vmem:[#allocation4 + $0x50] sm:$0xff]  ;;  %v730_v38 = vpack.c.bf16 %v274_v32, %v272_v29  ;;  %v333_v39 = vld [vmem:[#allocation6 + $0x208] sm:$0xff] }
  0x53   :  { %715 = vmatpush1.bf16.msra.mxu0 %v714_v14  ;;  %v728_v31 = vpack.c.bf16 %v275_v28, %v273_v27  ;;  %v279_v34 = vld [vmem:[#allocation6 + $0x58] sm:$0xff]  ;;  %v94_v37 = vld [vmem:[#allocation4 + $0x70] sm:$0xff]  ;;  %v276_v42 = vld [vmem:[#allocation6 + $0x40] sm:$0xff] }
  0x54   :  { %717 = vmatprep.subr.bf16.mxu0 %v716_v17  ;;  %725 = vmatprep.subr.bf16.mxu1 %v724_v25  ;;  %v335_v40 = vld [vmem:[#allocation6 + $0x218] sm:$0xff]  ;;  %v732_v41 = vpack.c.bf16 %v279_v34, %v277_v33  ;;  %v278_v43 = vld [vmem:[#allocation6 + $0x50] sm:$0xff]  ;;  %v722_v44 = vpack.c.bf16 %v94_v37, %v90_v36  ;;  %v281_v45 = vld [vmem:[#allocation6 + $0x68] sm:$0xff] }
  0x55   :  { %727 = vmatpush1.bf16.msra.mxu1 %v726_v26  ;;  %v283_v46 = vld [vmem:[#allocation6 + $0x78] sm:$0xff]  ;;  %v788_v47 = vpack.c.bf16 %v335_v40, %v333_v39  ;;  %v332_v48 = vld [vmem:[#allocation6 + $0x200] sm:$0xff]  ;;  %v334_v49 = vld [vmem:[#allocation6 + $0x210] sm:$0xff]  ;;  %v734_v50 = vpack.c.bf16 %v278_v43, %v276_v42 }
  0x56   :  { %670 = vmatmul.mubr.msk.f32.vlgmr.msra.gmra.mrb[0].mxu0 %vm118_vm0, %v79_v21  ;;  %729 = vmatprep.subr.bf16.mxu1 %v728_v31  ;;  %v337_v51 = vld [vmem:[#allocation6 + $0x228] sm:$0xff]  ;;  %v339_v52 = vld [vmem:[#allocation6 + $0x238] sm:$0xff]  ;;  %v736_v53 = vpack.c.bf16 %v283_v46, %v281_v45  ;;  %v280_v54 = vld [vmem:[#allocation6 + $0x60] sm:$0xff]  ;;  %v790_v56 = vpack.c.bf16 %v334_v49, %v332_v48 }
  0x57   :  { %719 = vmatpush1.bf16.msra.mxu0 %v718_v30  ;;  %257 = vmatprep.mubr.f32.mxu0 %v1003_v0  ;;  %v282_v55 = vld [vmem:[#allocation6 + $0x70] sm:$0xff]  ;;  %v285_v57 = vld [vmem:[#allocation6 + $0x88] sm:$0xff]  ;;  %v287_v58 = vld [vmem:[#allocation6 + $0x98] sm:$0xff]  ;;  %v792_v59 = vpack.c.bf16 %v339_v52, %v337_v51 }
  0x58   :  { %721 = vmatprep.subr.bf16.mxu0 %v720_v35  ;;  %v336_v60 = vld [vmem:[#allocation6 + $0x220] sm:$0xff]  ;;  %v338_v61 = vld [vmem:[#allocation6 + $0x230] sm:$0xff]  ;;  %v738_v62 = vpack.c.bf16 %v282_v55, %v280_v54  ;;  %v341_v63 = vld [vmem:[#allocation6 + $0x248] sm:$0xff]  ;;  %v740_v1 = vpack.c.bf16 %v287_v58, %v285_v57 }
  0x59   :  { %731 = vmatpush1.bf16.msra.mxu1 %v730_v38  ;;  %v343_v0 = vld [vmem:[#allocation6 + $0x258] sm:$0xff]  ;;  %v284_v2 = vld [vmem:[#allocation6 + $0x80] sm:$0xff]  ;;  %v286_v3 = vld [vmem:[#allocation6 + $0x90] sm:$0xff]  ;;  %v794_v4 = vpack.c.bf16 %v338_v61, %v336_v60 }
  0x5a   :  { %733 = vmatprep.subr.bf16.mxu1 %v732_v41  ;;  %v289_v5 = vld [vmem:[#allocation6 + $0xa8] sm:$0xff]  ;;  %v291_v6 = vld [vmem:[#allocation6 + $0xb8] sm:$0xff]  ;;  %v796_v7 = vpack.c.bf16 %v343_v0, %v341_v63  ;;  %v340_v8 = vld [vmem:[#allocation6 + $0x240] sm:$0xff]  ;;  %v742_v10 = vpack.c.bf16 %v286_v3, %v284_v2 }
  0x5b   :  { %723 = vmatpush1.bf16.msra.mxu0 %v722_v44  ;;  %v342_v9 = vld [vmem:[#allocation6 + $0x250] sm:$0xff]  ;;  %v345_v11 = vld [vmem:[#allocation6 + $0x268] sm:$0xff]  ;;  %v347_v12 = vld [vmem:[#allocation6 + $0x278] sm:$0xff]  ;;  %v744_v13 = vpack.c.bf16 %v291_v6, %v289_v5 }
  0x5c   :  { %789 = vmatprep.subr.bf16.mxu0 %v788_v47  ;;  %v288_v14 = vld [vmem:[#allocation6 + $0xa0] sm:$0xff]  ;;  %v290_v15 = vld [vmem:[#allocation6 + $0xb0] sm:$0xff]  ;;  %v798_v16 = vpack.c.bf16 %v342_v9, %v340_v8  ;;  %v293_v17 = vld [vmem:[#allocation6 + $0xc8] sm:$0xff]  ;;  %v800_v19 = vpack.c.bf16 %v347_v12, %v345_v11 }
  0x5d   :  { %735 = vmatpush1.bf16.msra.mxu1 %v734_v50  ;;  %v295_v18 = vld [vmem:[#allocation6 + $0xd8] sm:$0xff]  ;;  %v344_v20 = vld [vmem:[#allocation6 + $0x260] sm:$0xff]  ;;  %v746_v22 = vpack.c.bf16 %v290_v15, %v288_v14  ;;  %v349_v23 = vld [vmem:[#allocation6 + $0x288] sm:$0xff] }
  0x5e   :  { %671 = vmatmul.mubr.msk.f32.vlgmr.msra.gmra.mrb[2].mxu0 %vm118_vm0, %v79_v21  ;;  %737 = vmatprep.subr.bf16.mxu1 %v736_v53  ;;  %v346_v21 = vld [vmem:[#allocation6 + $0x270] sm:$0xff]  ;;  %v351_v24 = vld [vmem:[#allocation6 + $0x298] sm:$0xff]  ;;  %v748_v25 = vpack.c.bf16 %v295_v18, %v293_v17  ;;  %v292_v26 = vld [vmem:[#allocation6 + $0xc0] sm:$0xff] }
  0x5f   :  { %791 = vmatpush1.bf16.msra.mxu0 %v790_v56  ;;  %v294_v27 = vld [vmem:[#allocation6 + $0xd0] sm:$0xff]  ;;  %v802_v28 = vpack.c.bf16 %v346_v21, %v344_v20  ;;  %v297_v29 = vld [vmem:[#allocation6 + $0xe8] sm:$0xff]  ;;  %v299_v30 = vld [vmem:[#allocation6 + $0xf8] sm:$0xff]  ;;  %v804_v31 = vpack.c.bf16 %v351_v24, %v349_v23 }
  0x60   :  { %793 = vmatprep.subr.bf16.mxu0 %v792_v59  ;;  %v348_v32 = vld [vmem:[#allocation6 + $0x280] sm:$0xff]  ;;  %v350_v33 = vld [vmem:[#allocation6 + $0x290] sm:$0xff]  ;;  %v750_v34 = vpack.c.bf16 %v294_v27, %v292_v26  ;;  %v353_v35 = vld [vmem:[#allocation6 + $0x2a8] sm:$0xff]  ;;  %v752_v37 = vpack.c.bf16 %v299_v30, %v297_v29 }
  0x61   :  { %739 = vmatpush1.bf16.msra.mxu1 %v738_v62  ;;  %v355_v36 = vld [vmem:[#allocation6 + $0x2b8] sm:$0xff]  ;;  %v296_v38 = vld [vmem:[#allocation6 + $0xe0] sm:$0xff]  ;;  %v298_v39 = vld [vmem:[#allocation6 + $0xf0] sm:$0xff]  ;;  %v806_v40 = vpack.c.bf16 %v350_v33, %v348_v32 }
  0x62   :  { %741 = vmatprep.subr.bf16.mxu1 %v740_v1  ;;  %v301_v41 = vld [vmem:[#allocation6 + $0x108] sm:$0xff]  ;;  %v303_v42 = vld [vmem:[#allocation6 + $0x118] sm:$0xff]  ;;  %v808_v43 = vpack.c.bf16 %v355_v36, %v353_v35  ;;  %v352_v44 = vld [vmem:[#allocation6 + $0x2a0] sm:$0xff]  ;;  %v754_v46 = vpack.c.bf16 %v298_v39, %v296_v38 }
  0x63   :  { %795 = vmatpush1.bf16.msra.mxu0 %v794_v4  ;;  %v354_v45 = vld [vmem:[#allocation6 + $0x2b0] sm:$0xff]  ;;  %v357_v47 = vld [vmem:[#allocation6 + $0x2c8] sm:$0xff]  ;;  %v359_v48 = vld [vmem:[#allocation6 + $0x2d8] sm:$0xff]  ;;  %v756_v49 = vpack.c.bf16 %v303_v42, %v301_v41 }
  0x64   :  { %797 = vmatprep.subr.bf16.mxu0 %v796_v7  ;;  %v300_v50 = vld [vmem:[#allocation6 + $0x100] sm:$0xff]  ;;  %v302_v51 = vld [vmem:[#allocation6 + $0x110] sm:$0xff]  ;;  %v810_v52 = vpack.c.bf16 %v354_v45, %v352_v44  ;;  %v305_v53 = vld [vmem:[#allocation6 + $0x128] sm:$0xff]  ;;  %v812_v55 = vpack.c.bf16 %v359_v48, %v357_v47 }
  0x65   :  { %743 = vmatpush1.bf16.msra.mxu1 %v742_v10  ;;  %v307_v54 = vld [vmem:[#allocation6 + $0x138] sm:$0xff]  ;;  %v356_v56 = vld [vmem:[#allocation6 + $0x2c0] sm:$0xff]  ;;  %v358_v57 = vld [vmem:[#allocation6 + $0x2d0] sm:$0xff]  ;;  %v758_v58 = vpack.c.bf16 %v302_v51, %v300_v50 }
  0x66   :  { %745 = vmatprep.subr.bf16.mxu1 %v744_v13  ;;  %v361_v59 = vld [vmem:[#allocation6 + $0x2e8] sm:$0xff]  ;;  %v363_v60 = vld [vmem:[#allocation6 + $0x2f8] sm:$0xff]  ;;  %v760_v61 = vpack.c.bf16 %v307_v54, %v305_v53  ;;  %v304_v62 = vld [vmem:[#allocation6 + $0x120] sm:$0xff]  ;;  %v814_v0 = vpack.c.bf16 %v358_v57, %v356_v56 }
  0x67   :  { %799 = vmatpush1.bf16.msra.mxu0 %v798_v16  ;;  %v306_v63 = vld [vmem:[#allocation6 + $0x130] sm:$0xff]  ;;  %v309_v1 = vld [vmem:[#allocation6 + $0x148] sm:$0xff]  ;;  %v311_v2 = vld [vmem:[#allocation6 + $0x158] sm:$0xff]  ;;  %v816_v3 = vpack.c.bf16 %v363_v60, %v361_v59 }
  0x68   :  { %801 = vmatprep.subr.bf16.mxu0 %v800_v19  ;;  %v360_v4 = vld [vmem:[#allocation6 + $0x2e0] sm:$0xff]  ;;  %v362_v5 = vld [vmem:[#allocation6 + $0x2f0] sm:$0xff]  ;;  %v762_v6 = vpack.c.bf16 %v306_v63, %v304_v62  ;;  %v365_v7 = vld [vmem:[#allocation6 + $0x308] sm:$0xff]  ;;  %v764_v9 = vpack.c.bf16 %v311_v2, %v309_v1 }
  0x69   :  { %747 = vmatpush1.bf16.msra.mxu1 %v746_v22  ;;  %v367_v8 = vld [vmem:[#allocation6 + $0x318] sm:$0xff]  ;;  %v308_v10 = vld [vmem:[#allocation6 + $0x140] sm:$0xff]  ;;  %v310_v11 = vld [vmem:[#allocation6 + $0x150] sm:$0xff]  ;;  %v818_v12 = vpack.c.bf16 %v362_v5, %v360_v4 }
  0x6a   :  { %749 = vmatprep.subr.bf16.mxu1 %v748_v25  ;;  %v313_v13 = vld [vmem:[#allocation6 + $0x168] sm:$0xff]  ;;  %v315_v14 = vld [vmem:[#allocation6 + $0x178] sm:$0xff]  ;;  %v820_v15 = vpack.c.bf16 %v367_v8, %v365_v7  ;;  %v364_v16 = vld [vmem:[#allocation6 + $0x300] sm:$0xff]  ;;  %v766_v18 = vpack.c.bf16 %v310_v11, %v308_v10 }
  0x6b   :  { %803 = vmatpush1.bf16.msra.mxu0 %v802_v28  ;;  %v366_v17 = vld [vmem:[#allocation6 + $0x310] sm:$0xff]  ;;  %v369_v19 = vld [vmem:[#allocation6 + $0x328] sm:$0xff]  ;;  %v371_v20 = vld [vmem:[#allocation6 + $0x338] sm:$0xff]  ;;  %v768_v21 = vpack.c.bf16 %v315_v14, %v313_v13 }
  0x6c   :  { %805 = vmatprep.subr.bf16.mxu0 %v804_v31  ;;  %v312_v22 = vld [vmem:[#allocation6 + $0x160] sm:$0xff]  ;;  %v314_v23 = vld [vmem:[#allocation6 + $0x170] sm:$0xff]  ;;  %v822_v24 = vpack.c.bf16 %v366_v17, %v364_v16  ;;  %v317_v25 = vld [vmem:[#allocation6 + $0x188] sm:$0xff]  ;;  %v824_v27 = vpack.c.bf16 %v371_v20, %v369_v19 }
  0x6d   :  { %751 = vmatpush1.bf16.msra.mxu1 %v750_v34  ;;  %v319_v26 = vld [vmem:[#allocation6 + $0x198] sm:$0xff]  ;;  %v368_v28 = vld [vmem:[#allocation6 + $0x320] sm:$0xff]  ;;  %v370_v29 = vld [vmem:[#allocation6 + $0x330] sm:$0xff]  ;;  %v770_v30 = vpack.c.bf16 %v314_v23, %v312_v22 }
  0x6e   :  { %753 = vmatprep.subr.bf16.mxu1 %v752_v37  ;;  %v373_v31 = vld [vmem:[#allocation6 + $0x348] sm:$0xff]  ;;  %v375_v32 = vld [vmem:[#allocation6 + $0x358] sm:$0xff]  ;;  %v772_v33 = vpack.c.bf16 %v319_v26, %v317_v25  ;;  %v316_v34 = vld [vmem:[#allocation6 + $0x180] sm:$0xff]  ;;  %v826_v36 = vpack.c.bf16 %v370_v29, %v368_v28  ;;  %v98_v29 = vlaneseq }
  0x6f   :  { %807 = vmatpush1.bf16.msra.mxu0 %v806_v40  ;;  %v318_v35 = vld [vmem:[#allocation6 + $0x190] sm:$0xff]  ;;  %v321_v37 = vld [vmem:[#allocation6 + $0x1a8] sm:$0xff]  ;;  %v323_v38 = vld [vmem:[#allocation6 + $0x1b8] sm:$0xff]  ;;  %v828_v39 = vpack.c.bf16 %v375_v32, %v373_v31 }
  0x70   :  { %809 = vmatprep.subr.bf16.mxu0 %v808_v43  ;;  %v372_v40 = vld [vmem:[#allocation6 + $0x340] sm:$0xff]  ;;  %v374_v41 = vld [vmem:[#allocation6 + $0x350] sm:$0xff]  ;;  %v774_v42 = vpack.c.bf16 %v318_v35, %v316_v34  ;;  %v377_v43 = vld [vmem:[#allocation6 + $0x368] sm:$0xff]  ;;  %v776_v45 = vpack.c.bf16 %v323_v38, %v321_v37 }
  0x71   :  { %755 = vmatpush1.bf16.msra.mxu1 %v754_v46  ;;  %v379_v44 = vld [vmem:[#allocation6 + $0x378] sm:$0xff]  ;;  %v320_v46 = vld [vmem:[#allocation6 + $0x1a0] sm:$0xff]  ;;  %v322_v47 = vld [vmem:[#allocation6 + $0x1b0] sm:$0xff]  ;;  %v830_v48 = vpack.c.bf16 %v374_v41, %v372_v40 }
  0x72   :  { %757 = vmatprep.subr.bf16.mxu1 %v756_v49  ;;  %v325_v49 = vld [vmem:[#allocation6 + $0x1c8] sm:$0xff]  ;;  %v327_v50 = vld [vmem:[#allocation6 + $0x1d8] sm:$0xff]  ;;  %v832_v51 = vpack.c.bf16 %v379_v44, %v377_v43  ;;  %v378_v53 = vld [vmem:[#allocation6 + $0x370] sm:$0xff]  ;;  %v778_v54 = vpack.c.bf16 %v322_v47, %v320_v46 }
  0x73   :  { %811 = vmatpush1.bf16.msra.mxu0 %v810_v52  ;;  %v376_v52 = vld [vmem:[#allocation6 + $0x360] sm:$0xff]  ;;  %v383_v56 = vld [vmem:[#allocation6 + $0x398] sm:$0xff]  ;;  %v780_v57 = vpack.c.bf16 %v327_v50, %v325_v49  ;;  %v329_v2 = vld [vmem:[#allocation6 + $0x1e8] sm:$0xff] }
  0x74   :  { %813 = vmatprep.subr.bf16.mxu0 %v812_v55  ;;  %v381_v55 = vld [vmem:[#allocation6 + $0x388] sm:$0xff]  ;;  %v324_v60 = vld [vmem:[#allocation6 + $0x1c0] sm:$0xff]  ;;  %v330_v8 = vld [vmem:[#allocation6 + $0x1f0] sm:$0xff] }
  0x75   :  { %759 = vmatpush1.bf16.msra.mxu1 %v758_v58  ;;  %v834_v58 = vpack.c.bf16 %v378_v53, %v376_v52  ;;  %v836_v59 = vpack.c.bf16 %v383_v56, %v381_v55  ;;  %v380_v62 = vld [vmem:[#allocation6 + $0x380] sm:$0xff]  ;;  %v385_v4 = vld [vmem:[#allocation6 + $0x3a8] sm:$0xff]  ;;  %v96_v32 = vld [vmem:[%s1122_s2] sm:$0xf] }
  0x76   :  { %761 = vmatprep.subr.bf16.mxu1 %v760_v61  ;;  %v326_v61 = vld [vmem:[#allocation6 + $0x1d0] sm:$0xff]  ;;  %v328_v7 = vld [vmem:[#allocation6 + $0x1e0] sm:$0xff]  ;;  %v389_v14 = vld [vmem:[#allocation6 + $0x3c8] sm:$0xff] }
  0x77   :  { %815 = vmatpush1.bf16.msra.mxu0 %v814_v0  ;;  %v782_v63 = vpack.c.bf16 %v326_v61, %v324_v60  ;;  %v382_v0 = vld [vmem:[#allocation6 + $0x390] sm:$0xff]  ;;  %v786_v10 = vpack.c.bf16 %v330_v8, %v328_v7  ;;  %v384_v11 = vld [vmem:[#allocation6 + $0x3a0] sm:$0xff]  ;;  %v393_v20 = vld [vmem:[#allocation6 + $0x3e8] sm:$0xff] }
  0x78   :  { %817 = vmatprep.subr.bf16.mxu0 %v816_v3  ;;  %v838_v1 = vpack.c.bf16 %v382_v0, %v380_v62  ;;  %v331_v3 = vld [vmem:[#allocation6 + $0x1f8] sm:$0xff]  ;;  %v388_v17 = vld [vmem:[#allocation6 + $0x3c0] sm:$0xff]  ;;  %v553_v41 = vld [vmem:[#allocation7 + $0x8] sm:$0xff] }
  0x79   :  { %763 = vmatpush1.bf16.msra.mxu1 %v762_v6  ;;  %v784_v5 = vpack.c.bf16 %v331_v3, %v329_v2  ;;  %v387_v6 = vld [vmem:[#allocation6 + $0x3b8] sm:$0xff]  ;;  %v392_v23 = vld [vmem:[#allocation6 + $0x3e0] sm:$0xff]  ;;  %v570_v44 = vld [vmem:[#allocation7 + $0x90] sm:$0xff] }
  0x7a   :  { %765 = vmatprep.subr.bf16.mxu1 %v764_v9  ;;  %v840_v9 = vpack.c.bf16 %v387_v6, %v385_v4  ;;  %v568_v26 = vld [vmem:[#allocation7 + $0x80] sm:$0xff]  ;;  %v555_v52 = vld [vmem:[#allocation7 + $0x18] sm:$0xff]  ;;  %v573_v55 = vld [vmem:[#allocation7 + $0xa8] sm:$0xff] }
  0x7b   :  { %819 = vmatpush1.bf16.msra.mxu0 %v818_v12  ;;  %v386_v12 = vld [vmem:[#allocation6 + $0x3b0] sm:$0xff]  ;;  %v552_v40 = vld [vmem:[#allocation7] sm:$0xff]  ;;  %v557_v62 = vld [vmem:[#allocation7 + $0x28] sm:$0xff] }
  0x7c   :  { %821 = vmatprep.subr.bf16.mxu0 %v820_v15  ;;  %v842_v13 = vpack.c.bf16 %v386_v12, %v384_v11  ;;  %v391_v15 = vld [vmem:[#allocation6 + $0x3d8] sm:$0xff]  ;;  %v556_v61 = vld [vmem:[#allocation7 + $0x20] sm:$0xff]  ;;  %v574_v0 = vld [vmem:[#allocation7 + $0xb0] sm:$0xff] }
  0x7d   :  { %767 = vmatpush1.bf16.msra.mxu1 %v766_v18  ;;  %v844_v16 = vpack.c.bf16 %v391_v15, %v389_v14  ;;  %v390_v18 = vld [vmem:[#allocation6 + $0x3d0] sm:$0xff]  ;;  %v862_v3 = vpack.c.bf16 %v557_v62, %v556_v61  ;;  %v559_v7 = vld [vmem:[#allocation7 + $0x38] sm:$0xff]  ;;  %v576_v8 = vld [vmem:[#allocation7 + $0xc0] sm:$0xff] }
  0x7e   :  { %769 = vmatprep.subr.bf16.mxu1 %v768_v21  ;;  %v846_v19 = vpack.c.bf16 %v390_v18, %v388_v17  ;;  %v395_v21 = vld [vmem:[#allocation6 + $0x3f8] sm:$0xff]  ;;  %v558_v6 = vld [vmem:[#allocation7 + $0x30] sm:$0xff]  ;;  %v560_v12 = vld [vmem:[#allocation7 + $0x40] sm:$0xff] }
  0x7f   :  { %823 = vmatpush1.bf16.msra.mxu0 %v822_v24  ;;  %v848_v22 = vpack.c.bf16 %v395_v21, %v393_v20  ;;  %v394_v24 = vld [vmem:[#allocation6 + $0x3f0] sm:$0xff]  ;;  %v580_v21 = vld [vmem:[#allocation7 + $0xe0] sm:$0xff] }
  0x80   :  { %825 = vmatprep.subr.bf16.mxu0 %v824_v27  ;;  %v850_v25 = vpack.c.bf16 %v394_v24, %v392_v23  ;;  %v569_v27 = vld [vmem:[#allocation7 + $0x88] sm:$0xff]  ;;  %v578_v15 = vld [vmem:[#allocation7 + $0xd0] sm:$0xff]  ;;  %v564_v24 = vld [vmem:[#allocation7 + $0x60] sm:$0xff] }
  0x81   :  { %771 = vmatpush1.bf16.msra.mxu1 %v770_v30  ;;  %v852_v28 = vpack.c.bf16 %v569_v27, %v568_v26  ;;  %v1094_v30 = vshrl.u32 %v98_v29, 7  ;;  %v562_v18 = vld [vmem:[#allocation7 + $0x50] sm:$0xff] }
  0x82   :  { %773 = vmatprep.subr.bf16.mxu1 %v772_v33  ;;  %v582_v27 = vld [vmem:[#allocation7 + $0xf0] sm:$0xff] }
  0x83   :  { %827 = vmatpush1.bf16.msra.mxu0 %v826_v36  ;;  %v100_v31 = vsub.s32 0, %v1094_v30  ;;  %v104_v33 = vsub.s32 1, %v1094_v30  ;;  %v112_v43 = vsub.s32 3, %v1094_v30 }
  0x84   :  { %829 = vmatprep.subr.bf16.mxu0 %v828_v39  ;;  %v108_v39 = vsub.s32 2, %v1094_v30 }
  0x85   :  { %775 = vmatpush1.bf16.msra.mxu1 %v774_v42  ;;  %v101_v34 = vrot.slane %v96_v32, %v100_v31  ;;  %v105_v35 = vrot.slane %v96_v32, %v104_v33  ;;  %v113_v53 = vrot.slane %v96_v32, %v112_v43 }
  0x86   :  { %777 = vmatprep.subr.bf16.mxu1 %v776_v45  ;;  %v571_v45 = vld [vmem:[#allocation7 + $0x98] sm:$0xff]  ;;  %v109_v49 = vrot.slane %v96_v32, %v108_v39  ;;  %v566_v32 = vld [vmem:[#allocation7 + $0x70] sm:$0xff] }
  0x87   :  { %831 = vmatpush1.bf16.msra.mxu0 %v830_v48  ;;  %v854_v48 = vpack.c.bf16 %v553_v41, %v552_v40  ;;  %v856_v50 = vpack.c.bf16 %v571_v45, %v570_v44 }
  0x88   :  { %833 = vmatprep.subr.bf16.mxu0 %v832_v51  ;;  %v554_v51 = vld [vmem:[#allocation7 + $0x10] sm:$0xff] }
  0x89   :  { %779 = vmatpush1.bf16.msra.mxu1 %v778_v54  ;;  %v572_v54 = vld [vmem:[#allocation7 + $0xa0] sm:$0xff] }
  0x8a   :  { %781 = vmatprep.subr.bf16.mxu1 %v780_v57  ;;  %v858_v57 = vpack.c.bf16 %v555_v52, %v554_v51  ;;  %v860_v60 = vpack.c.bf16 %v573_v55, %v572_v54 }
  0x8b   :  { %835 = vmatpush1.bf16.msra.mxu0 %v834_v58 }
  0x8c   :  { %837 = vmatprep.subr.bf16.mxu0 %v836_v59 }
  0x8d   :  { %783 = vmatpush1.bf16.msra.mxu1 %v782_v63 }
  0x8e   :  { %785 = vmatprep.subr.bf16.mxu1 %v784_v5 }
  0x8f   :  { %839 = vmatpush1.bf16.msra.mxu0 %v838_v1  ;;  %v575_v1 = vld [vmem:[#allocation7 + $0xb8] sm:$0xff] }
  0x90   :  { %841 = vmatprep.subr.bf16.mxu0 %v840_v9  ;;  %v864_v5 = vpack.c.bf16 %v575_v1, %v574_v0  ;;  %v577_v9 = vld [vmem:[#allocation7 + $0xc8] sm:$0xff] }
  0x91   :  { %787 = vmatpush1.bf16.msra.mxu1 %v786_v10  ;;  %v866_v10 = vpack.c.bf16 %v559_v7, %v558_v6  ;;  %v868_v11 = vpack.c.bf16 %v577_v9, %v576_v8 }
  0x92   :  { %853 = vmatprep.subr.bf16.mxu1 %v852_v28  ;;  %v583_v28 = vld [vmem:[#allocation7 + $0xf8] sm:$0xff] }
  0x93   :  { %843 = vmatpush1.bf16.msra.mxu0 %v842_v13  ;;  %v561_v13 = vld [vmem:[#allocation7 + $0x48] sm:$0xff]  ;;  %v880_v29 = vpack.c.bf16 %v583_v28, %v582_v27 }
  0x94   :  { %845 = vmatprep.subr.bf16.mxu0 %v844_v16  ;;  %v870_v14 = vpack.c.bf16 %v561_v13, %v560_v12  ;;  %v579_v16 = vld [vmem:[#allocation7 + $0xd8] sm:$0xff] }
  0x95   :  { %v872_v17 = vpack.c.bf16 %v579_v16, %v578_v15 }
  0x97   :  { %847 = vmatpush1.bf16.msra.mxu0 %v846_v19  ;;  %v563_v19 = vld [vmem:[#allocation7 + $0x58] sm:$0xff] }
  0x98   :  { %849 = vmatprep.subr.bf16.mxu0 %v848_v22  ;;  %v874_v20 = vpack.c.bf16 %v563_v19, %v562_v18  ;;  %v581_v22 = vld [vmem:[#allocation7 + $0xe8] sm:$0xff] }
  0x99   :  { %v876_v23 = vpack.c.bf16 %v581_v22, %v580_v21 }
  0x9b   :  { %851 = vmatpush1.bf16.msra.mxu0 %v850_v25  ;;  %v565_v25 = vld [vmem:[#allocation7 + $0x68] sm:$0xff] }
  0x9c   :  { %v878_v26 = vpack.c.bf16 %v565_v25, %v564_v24 }
 0x129   :  { %v188_v36 = vpop.f32.mrb[0].mxu0 }
 0x12a   :  { %v189_v37 = vadd.f32 %v188_v36, %v101_v34  ;;  %v190_v38 = vpop.f32.mrb[1].mxu0  ;;  %v567_v34 = vld [vmem:[#allocation7 + $0x78] sm:$0xff] }
 0x12b   :  { %v191_v42 = vadd.f32 %v190_v38, %v105_v35  ;;  %v882_v35 = vpack.c.bf16 %v567_v34, %v566_v32  ;;  %v396_v36 = vld [vmem:[%s1124_s4] sm:$0x3] }
 0x12c   :  { %v264_v46 = vmax.f32 %v189_v37, 0.0  ;;  %v401_v39 = vrot.slane %v396_v36, %v100_v31  ;;  %v405_v40 = vrot.slane %v396_v36, %v104_v33 }
 0x12d   :  { %v265_v47 = vmax.f32 %v191_v42, 0.0 }
 0x12f   :  { %472 = vmatprep.mubr.f32.mxu1 %v265_v47 }
 0x130   :  { %473 = vmatmul.mubr.f32.vlgmr.msra.gmra.mrb[0].mxu1 %v264_v46 }
 0x131   :  { %v259_v56 = vpop.f32.mrb[2].mxu0  ;;  %855 = vmatpush3.bf16.msra.mxu1 %v854_v48 }
 0x132   :  { %v260_v58 = vadd.f32 %v259_v56, %v109_v49  ;;  %v261_v59 = vpop.f32.mrb[3].mxu0  ;;  %857 = vmatprep.subr.bf16.mxu1 %v856_v50  ;;  %v672_v50 = vld [vmem:[%s1126_s6] ss:$0 sm:$0xff] }
 0x133   :  { %v262_v63 = vadd.f32 %v261_v59, %v113_v53 }
 0x134   :  { %v266_v4 = vmax.f32 %v260_v58, 0.0 }
 0x135   :  { %v267_v2 = vmax.f32 %v262_v63, 0.0  ;;  %859 = vmatpush3.bf16.msra.mxu1 %v858_v57 }
 0x136   :  { %861 = vmatprep.subr.bf16.mxu1 %v860_v60 }
 0x137   :  { %543 = vmatprep.mubr.f32.mxu0 %v267_v2 }
 0x138   :  { %544 = vmatmul.mubr.f32.vlgmr.msra.gmra.mrb[4].mxu0 %v266_v4 }
 0x139   :  { %863 = vmatpush3.bf16.msra.mxu1 %v862_v3 }
 0x13a   :  { %865 = vmatprep.subr.bf16.mxu1 %v864_v5 }
 0x13d   :  { %867 = vmatpush3.bf16.msra.mxu1 %v866_v10 }
 0x13e   :  { %869 = vmatprep.subr.bf16.mxu1 %v868_v11 }
 0x141   :  { %871 = vmatpush3.bf16.msra.mxu1 %v870_v14 }
 0x142   :  { %873 = vmatprep.subr.bf16.mxu1 %v872_v17 }
 0x145   :  { %875 = vmatpush3.bf16.msra.mxu1 %v874_v20 }
 0x146   :  { %877 = vmatprep.subr.bf16.mxu1 %v876_v23 }
 0x149   :  { %879 = vmatpush3.bf16.msra.mxu1 %v878_v26 }
 0x14a   :  { %881 = vmatprep.subr.bf16.mxu1 %v880_v29 }
 0x14d   :  { %883 = vmatpush3.bf16.msra.mxu1 %v882_v35 }
 0x203   :  { %v474_v37 = vpop.f32.mrb[0].mxu1 }
 0x204   :  { %v476_v38 = vpop.f32.mrb[1].mxu1  ;;  %v475_v41 = vadd.f32 %v474_v37, %v401_v39 }
 0x205   :  { %v477_v42 = vadd.f32 %v476_v38, %v405_v40 }
 0x20b   :  { %v545_v43 = vpop.f32.mrb[4].mxu0 }
 0x20c   :  { %v546_v44 = vadd.f32 %v545_v43, %v475_v41  ;;  %v547_v45 = vpop.f32.mrb[5].mxu0 }
 0x20d   :  { %v548_v46 = vadd.f32 %v547_v45, %v477_v42 }
 0x20e   :  { %v550_v48 = vmax.f32 %v546_v44, 0.0 }
 0x20f   :  { %v551_v47 = vmax.f32 %v548_v46, 0.0 }
 0x211   :  { %655 = vmatprep.mubr.f32.mxu1 %v551_v47 }
 0x212   :  { %656 = vmatmul.mubr.f32.vlgmr.msra.gmra.mrb[2].mxu1 %v550_v48 }
 0x2e5   :  { %v705_v49 = vpop.f32.mrb[2].mxu1 }
 0x2e6   :  { %v706_v51 = vpop.f32.mrb[3].mxu1 }
 0x2e7   :  { %v707_v31 = vadd.f32 %v706_v51, %v705_v49 }
 0x2e9   :  { %v658_v30 = vadd.f32 %v707_v31, %v672_v50 }
 0x2eb   :  { %662 = vst.msk [vmem:[%s1127_s7] sm:$0xff] %vm661_vm1, %v658_v30 }
 0x2ec   :  { %667 = vsyncpa [#allocation3], 1 }
 0x2ed   :  { %668 = vsyncpa [#allocation5], 1 }
 0x2ee   :  { %669 = vsyncpa [#allocation8], 1 }

</bundles_post_ra>
